<compile_context>
chip_gen: v6e
topology: v6e:2x2x1
jax: 0.10.0
libtpu: 0.0.40
codegen_flags: <defaults>
</compile_context>

<pallas_src>
import math
from functools import partial

import jax
import jax.numpy as jnp
from jax.experimental import pallas as pl
from jax.experimental.pallas import tpu as pltpu


def _pick_tile(dim, preferred, align):
    """Largest multiple of `align` that divides `dim` and is <= preferred.
    Falls back to the full dimension (block == full array dim is always legal)."""
    t = min(preferred, dim)
    t = (t // align) * align
    while t >= align:
        if dim % t == 0:
            return t
        t -= align
    return dim


def _mix_arcface_kernel(y1_ref, y2_ref, logits_ref, loss1_ref, loss2_ref,
                        m_sc, l_sc, t1_sc, t2_sc,
                        *, s, cos_m, sin_m, th, mm, block_c):
    ci = pl.program_id(1)

    @pl.when(ci == 0)
    def _init():
        m_sc[...] = jnp.full_like(m_sc, -jnp.inf)
        l_sc[...] = jnp.zeros_like(l_sc)
        t1_sc[...] = jnp.zeros_like(t1_sc)
        t2_sc[...] = jnp.zeros_like(t2_sc)

    cosine = logits_ref[...].astype(jnp.float32)      # (TB, TC)
    x = cosine * s                                    # scaled, margin-free logits

    # ---- online logsumexp over the class axis --------------------------------
    tile_max = jnp.max(x, axis=-1, keepdims=True)
    m_new = jnp.maximum(m_sc[...], tile_max)
    alpha = jnp.exp(m_sc[...] - m_new)                # exp(-inf)=0 on first tile
    l_sc[...] = alpha * l_sc[...] + jnp.sum(jnp.exp(x - m_new), axis=-1, keepdims=True)
    m_sc[...] = m_new

    # ---- extract the target cosines (margin only touches these) --------------
    col = jax.lax.broadcasted_iota(jnp.int32, cosine.shape, dimension=1) + ci * block_c
    t1_sc[...] += jnp.sum(jnp.where(col == y1_ref[...], cosine, 0.0),
                          axis=-1, keepdims=True)
    t2_sc[...] += jnp.sum(jnp.where(col == y2_ref[...], cosine, 0.0),
                          axis=-1, keepdims=True)

    # ---- finalize: per-row ArcFace margin + cross-entropy ---------------------
    @pl.when(ci == pl.num_programs(1) - 1)
    def _finalize():
        m = m_sc[...]
        l = l_sc[...]

        def per_row_loss(cos_t):
            # NOTE: matches torch.sqrt(1 - cosine**2) exactly (no clamp); NaN if
            # |cos_t| > 1, same failure behavior as the reference (target logit).
            sine = jnp.sqrt(1.0 - cos_t * cos_t)
            phi = cos_t * cos_m - sine * sin_m
            phi = jnp.where(cos_t > th, phi, cos_t - mm)
            # swap the target term of the sum of exponentials:
            #   exp(s*cos_t - m)  ->  exp(s*phi - m)
            l_adj = l - jnp.exp(s * cos_t - m) + jnp.exp(s * phi - m)
            # CE = logsumexp(modified logits) - (target modified logit)
            return m + jnp.log(l_adj) - s * phi

        loss1_ref[...] = per_row_loss(t1_sc[...])
        loss2_ref[...] = per_row_loss(t2_sc[...])


def _arcface_per_row_losses(logits, y1, y2, *, s=30.0, m=0.5,
                            block_b=256, block_c=2048):
    """Per-row ArcFace losses for two label sets in a single pass over logits."""
    B, C = logits.shape
    tb = _pick_tile(B, block_b, 8)
    tc = _pick_tile(C, block_c, 128)

    cos_m, sin_m = math.cos(m), math.sin(m)
    th = math.cos(math.pi - m)
    mm = math.sin(math.pi - m) * m

    y1_2d = y1.astype(jnp.int32).reshape(B, 1)
    y2_2d = y2.astype(jnp.int32).reshape(B, 1)

    kernel = partial(_mix_arcface_kernel, s=float(s), cos_m=cos_m, sin_m=sin_m,
                     th=th, mm=mm, block_c=tc)

    loss1, loss2 = pl.pallas_call(
        kernel,
        out_shape=(jax.ShapeDtypeStruct((B, 1), jnp.float32),
                   jax.ShapeDtypeStruct((B, 1), jnp.float32)),
        grid_spec=pltpu.PrefetchScalarGridSpec(
            num_scalar_prefetch=0,
            grid=(B // tb, C // tc),
            in_specs=[
                pl.BlockSpec((tb, 1), lambda bi, ci: (bi, 0)),    # y1
                pl.BlockSpec((tb, 1), lambda bi, ci: (bi, 0)),    # y2
                pl.BlockSpec((tb, tc), lambda bi, ci: (bi, ci)),  # logits (streamed)
            ],
            out_specs=[
                pl.BlockSpec((tb, 1), lambda bi, ci: (bi, 0)),    # per-row loss(y1)
                pl.BlockSpec((tb, 1), lambda bi, ci: (bi, 0)),    # per-row loss(y2)
            ],
            scratch_shapes=[pltpu.VMEM((tb, 1), jnp.float32)] * 4,  # m, l, t1, t2
        ),
        compiler_params=pltpu.CompilerParams(
            dimension_semantics=("parallel", "arbitrary"),
            vmem_limit_bytes=32 * 1024 * 1024,
        ),
    )(y1_2d, y2_2d, logits)

    return loss1[:, 0], loss2[:, 0]


class MixLoss:
    """Pallas port of MixLoss(loss_name='ArcFaceLoss', loss_params={'s':..., 'm':...})."""
    # TODO(synk): the PyTorch module dispatches the inner loss via eval(loss_name);
    # here the inner loss is fixed to ArcFaceLoss at construction time.

    def __init__(self, s=30.0, m=0.5, block_b=256, block_c=2048):
        self.s, self.m = s, m
        self.block_b, self.block_c = block_b, block_c

    def _arcface(self, p, y1, y2):
        return _arcface_per_row_losses(p, y1, y2, s=self.s, m=self.m,
                                       block_b=self.block_b, block_c=self.block_c)

    def __call__(self, p, t):
        if isinstance(t, dict) and 'lam' in t:
            lam = t['lam']
            # one pass over the logits computes per-row losses for BOTH label sets
            l1, l2 = self._arcface(p, t['y1'], t['y2'])
            # inner ArcFaceLoss reduces to a scalar (mean); outer .mean() is a no-op
            return lam * jnp.mean(l1) + (1.0 - lam) * jnp.mean(l2)
        # plain path: single label set (second output unused)
        l1, _ = self._arcface(p, t, t)
        return jnp.mean(l1)


if __name__ == "__main__":
    key = jax.random.PRNGKey(0)
    k1, k2, k3 = jax.random.split(key, 3)

    B, C = 16, 512
    # ArcFace expects cosine similarities in [-1, 1]; sample accordingly.
    logits = jax.random.uniform(k1, (B, C), dtype=jnp.float32,
                                minval=-1.0, maxval=1.0)
    y1 = jax.random.randint(k2, (B,), 0, C, dtype=jnp.int32)
    y2 = jax.random.randint(k3, (B,), 0, C, dtype=jnp.int32)
    lam = jnp.float32(0.3)

    # Small block sizes so the demo exercises the (batch, class) tiling and the
    # online-LSE accumulators; production defaults are (256, 2048).
    loss_fn = MixLoss(s=30.0, m=0.5, block_b=8, block_c=128)

    mixed = loss_fn(logits, {'lam': lam, 'y1': y1, 'y2': y2})
    plain = loss_fn(logits, y1)
    jax.block_until_ready((mixed, plain))

    # ---- pure-JAX reference of the same math ---------------------------------
    def ref_arcface(lg, lbl, s=30.0, m=0.5):
        cos_m, sin_m = math.cos(m), math.sin(m)
        th = math.cos(math.pi - m)
        mm_ = math.sin(math.pi - m) * m
        onehot = jax.nn.one_hot(lbl, lg.shape[1], dtype=jnp.float32)
        cosine = lg.astype(jnp.float32)
        sine = jnp.sqrt(1.0 - cosine ** 2)
        phi = cosine * cos_m - sine * sin_m
        phi = jnp.where(cosine > th, phi, cosine - mm_)
        out = (onehot * phi + (1.0 - onehot) * cosine) * s
        logprobs = jax.nn.log_softmax(out, axis=-1)
        return jnp.mean(jnp.sum(-logprobs * onehot, axis=-1))

    exp_mixed = lam * ref_arcface(logits, y1) + (1.0 - lam) * ref_arcface(logits, y2)
    exp_plain = ref_arcface(logits, y1)

    assert jnp.allclose(mixed, exp_mixed, rtol=1e-4, atol=1e-5), (mixed, exp_mixed)
    assert jnp.allclose(plain, exp_plain, rtol=1e-4, atol=1e-5), (plain, exp_plain)

    print("KERNEL_OK")
</pallas_src>

<mosaic_0001>
module attributes {stable_mosaic.version = 11 : i64} {
  func.func @_mix_arcface_kernel(%arg0: i32, %arg1: i32, %arg2: memref<8x1xi32, #tpu.memory_space<vmem>>, %arg3: memref<8x1xi32, #tpu.memory_space<vmem>>, %arg4: memref<8x128xf32, #tpu.memory_space<vmem>>, %arg5: memref<8x1xf32, #tpu.memory_space<vmem>>, %arg6: memref<8x1xf32, #tpu.memory_space<vmem>>, %arg7: memref<8x1xf32, #tpu.memory_space<vmem>>, %arg8: memref<8x1xf32, #tpu.memory_space<vmem>>, %arg9: memref<8x1xf32, #tpu.memory_space<vmem>>, %arg10: memref<8x1xf32, #tpu.memory_space<vmem>>) attributes {dimension_semantics = [#tpu.dimension_semantics<parallel>, #tpu.dimension_semantics<arbitrary>], iteration_bounds = array<i64: 2, 4>, scalar_prefetch = 0 : i64, scratch_operands = 4 : i64, tpu.core_type = #tpu.core_type<tc>, window_params = [{transform_indices = @transform_0, window_bounds = array<i64: 8, 1>}, {transform_indices = @transform_1, window_bounds = array<i64: 8, 1>}, {transform_indices = @transform_2, window_bounds = array<i64: 8, 128>}, {transform_indices = @transform_3, window_bounds = array<i64: 8, 1>}, {transform_indices = @transform_4, window_bounds = array<i64: 8, 1>}]} {
    %c0_i32 = arith.constant 0 : i32
    %0 = arith.cmpi eq, %arg1, %c0_i32 : i32
    %1 = arith.extui %0 : i1 to i32
    %c0_i32_0 = arith.constant 0 : i32
    %2 = arith.cmpi ne, %1, %c0_i32_0 : i32
    scf.if %2 {
      %cst_31 = arith.constant 0xFF800000 : f32
      %50 = vector.broadcast %cst_31 : f32 to vector<8x1xf32>
      %c0_32 = arith.constant 0 : index
      %c0_33 = arith.constant 0 : index
      %51 = vector.load %arg7[%c0_32, %c0_33] : memref<8x1xf32, #tpu.memory_space<vmem>>, vector<8x1xf32>
      tpu.vector_store %arg7[%c0_32, %c0_33], %50 {strides = array<i32>} : memref<8x1xf32, #tpu.memory_space<vmem>>, vector<8x1xf32>,
      %cst_34 = arith.constant 0.000000e+00 : f32
      %52 = vector.broadcast %cst_34 : f32 to vector<8x1xf32>
      %c0_35 = arith.constant 0 : index
      %c0_36 = arith.constant 0 : index
      %53 = vector.load %arg8[%c0_35, %c0_36] : memref<8x1xf32, #tpu.memory_space<vmem>>, vector<8x1xf32>
      tpu.vector_store %arg8[%c0_35, %c0_36], %52 {strides = array<i32>} : memref<8x1xf32, #tpu.memory_space<vmem>>, vector<8x1xf32>,
      %cst_37 = arith.constant 0.000000e+00 : f32
      %54 = vector.broadcast %cst_37 : f32 to vector<8x1xf32>
      %c0_38 = arith.constant 0 : index
      %c0_39 = arith.constant 0 : index
      %55 = vector.load %arg9[%c0_38, %c0_39] : memref<8x1xf32, #tpu.memory_space<vmem>>, vector<8x1xf32>
      tpu.vector_store %arg9[%c0_38, %c0_39], %54 {strides = array<i32>} : memref<8x1xf32, #tpu.memory_space<vmem>>, vector<8x1xf32>,
      %cst_40 = arith.constant 0.000000e+00 : f32
      %56 = vector.broadcast %cst_40 : f32 to vector<8x1xf32>
      %c0_41 = arith.constant 0 : index
      %c0_42 = arith.constant 0 : index
      %57 = vector.load %arg10[%c0_41, %c0_42] : memref<8x1xf32, #tpu.memory_space<vmem>>, vector<8x1xf32>
      tpu.vector_store %arg10[%c0_41, %c0_42], %56 {strides = array<i32>} : memref<8x1xf32, #tpu.memory_space<vmem>>, vector<8x1xf32>,
    } else {
    }
    %c0 = arith.constant 0 : index
    %c0_1 = arith.constant 0 : index
    %3 = vector.load %arg4[%c0, %c0_1] : memref<8x128xf32, #tpu.memory_space<vmem>>, vector<8x128xf32>
    %cst = arith.constant 3.000000e+01 : f32
    %4 = vector.broadcast %cst : f32 to vector<8x128xf32>
    %5 = arith.mulf %3, %4 : vector<8x128xf32>
    %cst_2 = arith.constant dense<0xFF800000> : vector<8xf32>
    %6 = vector.multi_reduction <maximumf>, %5, %cst_2 [1] : vector<8x128xf32> to vector<8xf32>
    %7 = vector.shape_cast %6 : vector<8xf32> to vector<8x1xf32>
    %c0_3 = arith.constant 0 : index
    %c0_4 = arith.constant 0 : index
    %8 = vector.load %arg7[%c0_3, %c0_4] : memref<8x1xf32, #tpu.memory_space<vmem>>, vector<8x1xf32>
    %9 = arith.maximumf %8, %7 : vector<8x1xf32>
    %c0_5 = arith.constant 0 : index
    %c0_6 = arith.constant 0 : index
    %10 = vector.load %arg7[%c0_5, %c0_6] : memref<8x1xf32, #tpu.memory_space<vmem>>, vector<8x1xf32>
    %11 = arith.subf %10, %9 : vector<8x1xf32>
    %12 = math.exp %11 : vector<8x1xf32>
    %c0_7 = arith.constant 0 : index
    %c0_8 = arith.constant 0 : index
    %13 = vector.load %arg8[%c0_7, %c0_8] : memref<8x1xf32, #tpu.memory_space<vmem>>, vector<8x1xf32>
    %14 = arith.mulf %12, %13 : vector<8x1xf32>
    %15 = vector.broadcast %9 : vector<8x1xf32> to vector<8x128xf32>
    %16 = arith.subf %5, %15 : vector<8x128xf32>
    %17 = math.exp %16 : vector<8x128xf32>
    %cst_9 = arith.constant dense<0.000000e+00> : vector<8xf32>
    %18 = vector.multi_reduction <add>, %17, %cst_9 [1] : vector<8x128xf32> to vector<8xf32>
    %19 = vector.shape_cast %18 : vector<8xf32> to vector<8x1xf32>
    %20 = arith.addf %14, %19 : vector<8x1xf32>
    %c0_10 = arith.constant 0 : index
    %c0_11 = arith.constant 0 : index
    %21 = vector.load %arg8[%c0_10, %c0_11] : memref<8x1xf32, #tpu.memory_space<vmem>>, vector<8x1xf32>
    tpu.vector_store %arg8[%c0_10, %c0_11], %20 {strides = array<i32>} : memref<8x1xf32, #tpu.memory_space<vmem>>, vector<8x1xf32>,
    %c0_12 = arith.constant 0 : index
    %c0_13 = arith.constant 0 : index
    %22 = vector.load %arg7[%c0_12, %c0_13] : memref<8x1xf32, #tpu.memory_space<vmem>>, vector<8x1xf32>
    tpu.vector_store %arg7[%c0_12, %c0_13], %9 {strides = array<i32>} : memref<8x1xf32, #tpu.memory_space<vmem>>, vector<8x1xf32>,
    %23 = tpu.iota {dimensions = array<i32: 1>} : vector<8x128xi32>
    %c128_i32 = arith.constant 128 : i32
    %24 = arith.muli %arg1, %c128_i32 : i32
    %25 = vector.broadcast %24 : i32 to vector<8x128xi32>
    %26 = arith.addi %23, %25 : vector<8x128xi32>
    %c0_14 = arith.constant 0 : index
    %c0_15 = arith.constant 0 : index
    %27 = vector.load %arg9[%c0_14, %c0_15] : memref<8x1xf32, #tpu.memory_space<vmem>>, vector<8x1xf32>
    %c0_16 = arith.constant 0 : index
    %c0_17 = arith.constant 0 : index
    %28 = vector.load %arg2[%c0_16, %c0_17] : memref<8x1xi32, #tpu.memory_space<vmem>>, vector<8x1xi32>
    %29 = vector.broadcast %28 : vector<8x1xi32> to vector<8x128xi32>
    %30 = arith.cmpi eq, %26, %29 : vector<8x128xi32>
    %cst_18 = arith.constant 0.000000e+00 : f32
    %31 = vector.broadcast %cst_18 : f32 to vector<8x128xf32>
    %32 = arith.select %30, %3, %31 : vector<8x128xi1>, vector<8x128xf32>
    %cst_19 = arith.constant dense<0.000000e+00> : vector<8xf32>
    %33 = vector.multi_reduction <add>, %32, %cst_19 [1] : vector<8x128xf32> to vector<8xf32>
    %34 = vector.shape_cast %33 : vector<8xf32> to vector<8x1xf32>
    %35 = arith.addf %27, %34 : vector<8x1xf32>
    %c0_20 = arith.constant 0 : index
    %c0_21 = arith.constant 0 : index
    %36 = vector.load %arg9[%c0_20, %c0_21] : memref<8x1xf32, #tpu.memory_space<vmem>>, vector<8x1xf32>
    tpu.vector_store %arg9[%c0_20, %c0_21], %35 {strides = array<i32>} : memref<8x1xf32, #tpu.memory_space<vmem>>, vector<8x1xf32>,
    %c0_22 = arith.constant 0 : index
    %c0_23 = arith.constant 0 : index
    %37 = vector.load %arg10[%c0_22, %c0_23] : memref<8x1xf32, #tpu.memory_space<vmem>>, vector<8x1xf32>
    %c0_24 = arith.constant 0 : index
    %c0_25 = arith.constant 0 : index
    %38 = vector.load %arg3[%c0_24, %c0_25] : memref<8x1xi32, #tpu.memory_space<vmem>>, vector<8x1xi32>
    %39 = vector.broadcast %38 : vector<8x1xi32> to vector<8x128xi32>
    %40 = arith.cmpi eq, %26, %39 : vector<8x128xi32>
    %cst_26 = arith.constant 0.000000e+00 : f32
    %41 = vector.broadcast %cst_26 : f32 to vector<8x128xf32>
    %42 = arith.select %40, %3, %41 : vector<8x128xi1>, vector<8x128xf32>
    %cst_27 = arith.constant dense<0.000000e+00> : vector<8xf32>
    %43 = vector.multi_reduction <add>, %42, %cst_27 [1] : vector<8x128xf32> to vector<8xf32>
    %44 = vector.shape_cast %43 : vector<8xf32> to vector<8x1xf32>
    %45 = arith.addf %37, %44 : vector<8x1xf32>
    %c0_28 = arith.constant 0 : index
    %c0_29 = arith.constant 0 : index
    %46 = vector.load %arg10[%c0_28, %c0_29] : memref<8x1xf32, #tpu.memory_space<vmem>>, vector<8x1xf32>
    tpu.vector_store %arg10[%c0_28, %c0_29], %45 {strides = array<i32>} : memref<8x1xf32, #tpu.memory_space<vmem>>, vector<8x1xf32>,
    %c3_i32 = arith.constant 3 : i32
    %47 = arith.cmpi eq, %arg1, %c3_i32 : i32
    %48 = arith.extui %47 : i1 to i32
    %c0_i32_30 = arith.constant 0 : i32
    %49 = arith.cmpi ne, %48, %c0_i32_30 : i32
    scf.if %49 {
      %c0_31 = arith.constant 0 : index
      %c0_32 = arith.constant 0 : index
      %50 = vector.load %arg7[%c0_31, %c0_32] : memref<8x1xf32, #tpu.memory_space<vmem>>, vector<8x1xf32>
      %c0_33 = arith.constant 0 : index
      %c0_34 = arith.constant 0 : index
      %51 = vector.load %arg8[%c0_33, %c0_34] : memref<8x1xf32, #tpu.memory_space<vmem>>, vector<8x1xf32>
      %c0_35 = arith.constant 0 : index
      %c0_36 = arith.constant 0 : index
      %52 = vector.load %arg9[%c0_35, %c0_36] : memref<8x1xf32, #tpu.memory_space<vmem>>, vector<8x1xf32>
      %53 = arith.mulf %52, %52 : vector<8x1xf32>
      %cst_37 = arith.constant 1.000000e+00 : f32
      %54 = vector.broadcast %cst_37 : f32 to vector<8x1xf32>
      %55 = arith.subf %54, %53 : vector<8x1xf32>
      %56 = math.sqrt %55 : vector<8x1xf32>
      %cst_38 = arith.constant 0.87758255 : f32
      %57 = vector.broadcast %cst_38 : f32 to vector<8x1xf32>
      %58 = arith.mulf %52, %57 : vector<8x1xf32>
      %cst_39 = arith.constant 0.47942555 : f32
      %59 = vector.broadcast %cst_39 : f32 to vector<8x1xf32>
      %60 = arith.mulf %56, %59 : vector<8x1xf32>
      %61 = arith.subf %58, %60 : vector<8x1xf32>
      %cst_40 = arith.constant -0.87758255 : f32
      %62 = vector.broadcast %cst_40 : f32 to vector<8x1xf32>
      %63 = arith.cmpf ogt, %52, %62 : vector<8x1xf32>
      %cst_41 = arith.constant 0.239712775 : f32
      %64 = vector.broadcast %cst_41 : f32 to vector<8x1xf32>
      %65 = arith.subf %52, %64 : vector<8x1xf32>
      %66 = arith.select %63, %61, %65 : vector<8x1xi1>, vector<8x1xf32>
      %cst_42 = arith.constant 3.000000e+01 : f32
      %67 = vector.broadcast %cst_42 : f32 to vector<8x1xf32>
      %68 = arith.mulf %67, %52 : vector<8x1xf32>
      %69 = arith.subf %68, %50 : vector<8x1xf32>
      %70 = math.exp %69 : vector<8x1xf32>
      %71 = arith.subf %51, %70 : vector<8x1xf32>
      %cst_43 = arith.constant 3.000000e+01 : f32
      %72 = vector.broadcast %cst_43 : f32 to vector<8x1xf32>
      %73 = arith.mulf %72, %66 : vector<8x1xf32>
      %74 = arith.subf %73, %50 : vector<8x1xf32>
      %75 = math.exp %74 : vector<8x1xf32>
      %76 = arith.addf %71, %75 : vector<8x1xf32>
      %77 = math.log %76 : vector<8x1xf32>
      %78 = arith.addf %50, %77 : vector<8x1xf32>
      %cst_44 = arith.constant 3.000000e+01 : f32
      %79 = vector.broadcast %cst_44 : f32 to vector<8x1xf32>
      %80 = arith.mulf %79, %66 : vector<8x1xf32>
      %81 = arith.subf %78, %80 : vector<8x1xf32>
      %c0_45 = arith.constant 0 : index
      %c0_46 = arith.constant 0 : index
      %82 = vector.load %arg5[%c0_45, %c0_46] : memref<8x1xf32, #tpu.memory_space<vmem>>, vector<8x1xf32>
      tpu.vector_store %arg5[%c0_45, %c0_46], %81 {strides = array<i32>} : memref<8x1xf32, #tpu.memory_space<vmem>>, vector<8x1xf32>,
      %c0_47 = arith.constant 0 : index
      %c0_48 = arith.constant 0 : index
      %83 = vector.load %arg10[%c0_47, %c0_48] : memref<8x1xf32, #tpu.memory_space<vmem>>, vector<8x1xf32>
      %84 = arith.mulf %83, %83 : vector<8x1xf32>
      %cst_49 = arith.constant 1.000000e+00 : f32
      %85 = vector.broadcast %cst_49 : f32 to vector<8x1xf32>
      %86 = arith.subf %85, %84 : vector<8x1xf32>
      %87 = math.sqrt %86 : vector<8x1xf32>
      %cst_50 = arith.constant 0.87758255 : f32
      %88 = vector.broadcast %cst_50 : f32 to vector<8x1xf32>
      %89 = arith.mulf %83, %88 : vector<8x1xf32>
      %cst_51 = arith.constant 0.47942555 : f32
      %90 = vector.broadcast %cst_51 : f32 to vector<8x1xf32>
      %91 = arith.mulf %87, %90 : vector<8x1xf32>
      %92 = arith.subf %89, %91 : vector<8x1xf32>
      %cst_52 = arith.constant -0.87758255 : f32
      %93 = vector.broadcast %cst_52 : f32 to vector<8x1xf32>
      %94 = arith.cmpf ogt, %83, %93 : vector<8x1xf32>
      %cst_53 = arith.constant 0.239712775 : f32
      %95 = vector.broadcast %cst_53 : f32 to vector<8x1xf32>
      %96 = arith.subf %83, %95 : vector<8x1xf32>
      %97 = arith.select %94, %92, %96 : vector<8x1xi1>, vector<8x1xf32>
      %cst_54 = arith.constant 3.000000e+01 : f32
      %98 = vector.broadcast %cst_54 : f32 to vector<8x1xf32>
      %99 = arith.mulf %98, %83 : vector<8x1xf32>
      %100 = arith.subf %99, %50 : vector<8x1xf32>
      %101 = math.exp %100 : vector<8x1xf32>
      %102 = arith.subf %51, %101 : vector<8x1xf32>
      %cst_55 = arith.constant 3.000000e+01 : f32
      %103 = vector.broadcast %cst_55 : f32 to vector<8x1xf32>
      %104 = arith.mulf %103, %97 : vector<8x1xf32>
      %105 = arith.subf %104, %50 : vector<8x1xf32>
      %106 = math.exp %105 : vector<8x1xf32>
      %107 = arith.addf %102, %106 : vector<8x1xf32>
      %108 = math.log %107 : vector<8x1xf32>
      %109 = arith.addf %50, %108 : vector<8x1xf32>
      %cst_56 = arith.constant 3.000000e+01 : f32
      %110 = vector.broadcast %cst_56 : f32 to vector<8x1xf32>
      %111 = arith.mulf %110, %97 : vector<8x1xf32>
      %112 = arith.subf %109, %111 : vector<8x1xf32>
      %c0_57 = arith.constant 0 : index
      %c0_58 = arith.constant 0 : index
      %113 = vector.load %arg6[%c0_57, %c0_58] : memref<8x1xf32, #tpu.memory_space<vmem>>, vector<8x1xf32>
      tpu.vector_store %arg6[%c0_57, %c0_58], %112 {strides = array<i32>} : memref<8x1xf32, #tpu.memory_space<vmem>>, vector<8x1xf32>,
    } else {
    }
    return
  }
  func.func @transform_0(%arg0: i32, %arg1: i32) -> (i32, i32) {
    %c0_i32 = arith.constant 0 : i32
    %c0_i32_0 = arith.constant 0 : i32
    return %arg0, %c0_i32 : i32, i32
  }
  func.func @transform_1(%arg0: i32, %arg1: i32) -> (i32, i32) {
    %c0_i32 = arith.constant 0 : i32
    %c0_i32_0 = arith.constant 0 : i32
    return %arg0, %c0_i32 : i32, i32
  }
  func.func @transform_2(%arg0: i32, %arg1: i32) -> (i32, i32) {
    %c0_i32 = arith.constant 0 : i32
    return %arg0, %arg1 : i32, i32
  }
  func.func @transform_3(%arg0: i32, %arg1: i32) -> (i32, i32) {
    %c0_i32 = arith.constant 0 : i32
    %c0_i32_0 = arith.constant 0 : i32
    return %arg0, %c0_i32 : i32, i32
  }
  func.func @transform_4(%arg0: i32, %arg1: i32) -> (i32, i32) {
    %c0_i32 = arith.constant 0 : i32
    %c0_i32_0 = arith.constant 0 : i32
    return %arg0, %c0_i32 : i32, i32
  }
}

</mosaic_0001>

<bundles_post_ra>
// kernel: tpu_custom_call.1
= control target key start
LH: loop header
LB: loop body
LE: loop exit
PB: predicated region body
PF: predicated region fallthrough
CT: control target
= control target key end

     0   :  { %10 = vsyncpa [#allocation7], 0  ;;  %s936_s0 = inlined_call_operand.vmem [shape: s32[16,1], index: 0, kind: input, shape index: {}]   ;;  %s937_s1 = inlined_call_operand.vmem [shape: s32[16,1], index: 1, kind: input, shape index: {}]   ;;  %s938_s2 = inlined_call_operand.hbm [shape: f32[16,512], index: 2, kind: input, shape index: {}]   ;;  %s939_s3 = inlined_call_operand.vmem [shape: f32[16,1], index: 3, kind: output, shape index: {0}]   ;;  %s940_s4 = inlined_call_operand.vmem [shape: f32[16,1], index: 4, kind: output, shape index: {1}]  }
   0x1   :  { %12 = vsyncpa [#allocation7 + $0x1], 0  ;;  %s777_s15 = smov 0   ;;  %s779_s16 = smov 0  }
   0x2   :  { %s781_s17 = smov 0   ;;  %s783_s18 = smov 0  }
   0x3   :  { %s785_s19 = smov 0   ;;  %s787_s20 = smov 0  }
   0x4   :  { %s789_s21 = smov 0   ;;  %s791_s22 = smov 0  }
   0x5 LB: > { %s536_s23 = sadd.s32 4294967295, %s746_s22   ;;  %s27_s24 = sadd.s32 1, %s738_s20  ;;  %s746_s22 = sphi %s791_s22, %s18_s22   ;;  %s742_s21 = sphi %s789_s21, %s953_s21   ;;  %s738_s20 = sphi %s787_s20, %s952_s20   ;;  %s734_s19 = sphi %s785_s19, %s951_s19   ;;  %s730_s18 = sphi %s783_s18, %s950_s18   ;;  %s726_s17 = sphi %s781_s17, %s949_s17   ;;  %s722_s16 = sphi %s779_s16, %s948_s16   ;;  %s718_s15 = sphi %s777_s15, %s947_s15  }
   0x6   : > { %p28_p0 = scmp.ge.s32.totalorder %s27_s24, 4  ;;  %s30_s25 = sadd.s32 1, %s742_s21 }
   0x7   : > { %s91_s26 = sadd.s32 1, %s726_s17  ;;  %p98_p1 = scmp.ne.s32.totalorder %s726_s17, %s722_s16 }
   0x8   : > { %s955_s24 = smov (%p28_p0, %s27_s24), 0  ;;  %s957_s25 = smov (!%p28_p0, %s30_s25), %s742_s21 }
   0x9   : > { %s87_s27 = ssub.s32 %s738_s20, %s955_s24  ;;  %p99_p2 = scmp.eq.s32.totalorder %s746_s22, 0 }
   0xa   : > { %p32_p3 = scmp.ge.s32.totalorder %s957_s25, 2  ;;  %p104_p4 = scmp.ne.s32.totalorder %s722_s16, %s718_s15 }
   0xb   : > { %p828_p5 = por %p99_p2, %p98_p1  ;;  %p105_p6 = scmp.eq.s32.totalorder %s536_s23, 0 }
   0xc   : > { %s959_s25 = smov (%p32_p3, %s957_s25), 0  ;;  %p562_p8 = scmp.lt.s32.totalorder %s746_s22, 8 }
   0xd   : > { %943 = sst [smem:[#allocation9_spill]] %s959_s25  ;;  %p834_p7 = por %p105_p6, %p104_p4 }
   0xe   : > { %s86_s30 = ssub.s32 %s742_s21, %s959_s25  ;;  %s194_s6 = sand.u32 1, %s726_s17  }
   0xf   : > { %s88_s5 = sor.u32 %s87_s27, %s86_s30  ;;  %s540_s7 = sshll.u32 %s194_s6, 3 }
  0x10   : > { %p89_p9 = scmp.eq.s32.totalorder %s88_s5, 0  ;;  %s541_s8 = sshll.u32 %s742_s21, 2 }
  0x11   : > { %s203_s10 = sadd.s32 %s738_s20, %s541_s8  ;;  %s198_s12 = scalar_lea.vmem [#allocation6], %s540_s7 }
  0x12   : > { %s844_s9 = scalar_select %p89_p9, %s726_s17, %s91_s26  }
  0x13   : > { %s542_s11 = sshll.u32 %s203_s10, 7  ;;  %s207_s13 = sshll.u32 %s198_s12, 4  ;;  %s208_s13 = int_to_ptr.vmem [resolvable:$true] %s207_s13 }
  0x14   : > { %s205_s23 = scalar_lea.hbm %s938_s2, %s542_s11  ;;  %p854_p10 = pnand %p562_p8, %p828_p5 }
  0x15   : > { %p543_p11 = scmp.ge.s32.totalorder %s746_s22, 1  ;;  %p212_p12 = scmp.lt.s32.totalorder %s746_s22, 9 }
  0x16   : > { %s195_s26 = scalar_lea.sflag [#allocation7], %s194_s6  ;;  %p654_p13 = pneg %p854_p10 }
  0x17   : > { %s665_s27 = scalar_lea.vmem %s208_s13, 128  ;;  %s748_s30 = smov [#allocation6]  }
  0x18   : > { %p666_p0 = scmp.ne.s32.totalorder %s208_s13, %s665_s27  ;;  %s670_s5 = sshll.u32 %s748_s30, 4  ;;  %s671_s5 = int_to_ptr.vmem [resolvable:$false] %s670_s5 }
  0x19   : > { %s672_s7 = scalar_lea.vmem %s671_s5, 256  ;;  %p673_p3 = scmp.lt.s32.totalorder %s208_s13, %s671_s5 }
  0x1a   : > { %p668_p1 = pnand %p666_p0, %p654_p13  ;;  %p674_p4 = scmp.lt.s32.totalorder %s672_s7, %s665_s27 }
  0x1c   : > { %p669_p2 = pneg %p668_p1  ;;  %p675_p5 = por %p674_p4, %p673_p3 }
  0x1e   : > { %p676_p6 = pnand %p675_p5, %p669_p2 }
  0x20   : > { %679 = shalt.err (!%p676_p6)
}
  0x21   : > { %561 = dma.hbm_to_vmem [thread:$0]  (!%p854_p10), %s205_s23, 128, %s208_s13, %s195_s26  }
  0x22   : > { %p213_p8 = pnand %p543_p11, %p212_p12 }
  0x23   : > { %s218_s28 = sand.u32 (!%p213_p8), 1, %s722_s16  }
  0x24   : > { %216 = sbr.rel (%p213_p8) target bundleno = 560 (0x230), region = 32  ;;  %s544_s6 = sshll.u32 (!%p213_p8), %s218_s28, 3 }
  0x25   : > { %s219_s8 = scalar_lea.sflag (!%p213_p8), [#allocation7], %s218_s28  ;;  %s222_s10 = scalar_lea.vmem (!%p213_p8), [#allocation6], %s544_s6 }
  0x29   : > { %713 = dma.done.wait (%p834_p7), %s219_s8, 128  }
  0x2a   : > { %715 = vsyncadd (%p834_p7), %s219_s8, 4294967168  ;;  %p258_p9 = scmp.lt.s32.totalorder %s734_s19, 1  ;;  %p549_p7 = scmp.ne.s32.totalorder %s730_s18, 0 }
  0x2c   : > { %s961_s19 = smov (!%p258_p9, %s734_s19), 1  ;;  %277 = sbr.rel (%p549_p7) target bundleno = 52 (0x34), region = 40 }
  0x2d   : > { %s875_s25 = sshll.u32 %s961_s19, 3 }
  0x2e   : > { %s261_s13 = scalar_lea.vmem %s936_s0, %s875_s25  ;;  %s265_s23 = scalar_lea.vmem %s937_s1, %s875_s25 }
  0x2f   : > { %s269_s27 = scalar_lea.vmem %s939_s3, %s875_s25  ;;  %s273_s19 = scalar_lea.vmem %s940_s4, %s875_s25 }
  0x31   : > { %vm278_vm0 = vcmask 7168   ;;  %v749_v0 = vmov -inf   ;;  %v750_v1 = vmov 0.0  }
  0x32   : > { %279 = vst.msk [vmem:[#allocation2] sm:$0xff] %vm278_vm0, %v749_v0  ;;  %280 = vst.msk [vmem:[#allocation3] sm:$0xff] %vm278_vm0, %v750_v1 }
  0x33   : > { %281 = vst.msk [vmem:[#allocation4] sm:$0xff] %vm278_vm0, %v750_v1  ;;  %282 = vst.msk [vmem:[#allocation5] sm:$0xff] %vm278_vm0, %v750_v1 }
  0x34 PF: > { %v283_v2 = vld [vmem:[%s222_s10] sm:$0xff]  ;;  %v751_v4 = vmov 0   ;;  %vm305_vm1 = vcmask 7168   ;;  %v308_v11 = vlaneseq  ;;  %s550_s7 = sshll.u32 %s730_s18, 7  ;;  %p551_p10 = scmp.ne.s32.totalorder %s730_s18, 3 }
  0x35   : > { %v284_v3 = vmul.f32 30.0, %v283_v2  ;;  %630 = vset.pattern.permute.xlu0 %v751_v4  ;;  %631 = vset.pattern.permute.xlu1 %v751_v4  ;;  %v314_v5 = vld [vmem:[%s261_s13] sm:$0xff]  ;;  %v311_v12 = vstv %s550_s7 }
  0x36   : > { %316 = vperm.xlu1 %631, %v314_v5   ;;  %v325_v6 = vld [vmem:[%s265_s23] sm:$0xff]  ;;  %v309_v13 = vand.u32 127, %v308_v11 }
  0x37   : > { %285 = vmax.xlane.f32.xlu0 %v284_v3 }
  0x38   : > { %v312_v14 = vadd.s32 %v311_v12, %v309_v13 }
  0x39   : > { %v287_v7 = vld [vmem:[#allocation2] sm:$0xff]  ;;  %v292_v28 = vld [vmem:[#allocation3] sm:$0xff] }
  0x3a   : > { %327 = vperm.xlu1 %631, %v325_v6   ;;  %v324_v23 = vld [vmem:[#allocation5] sm:$0xff]  ;;  %v313_v32 = vld [vmem:[#allocation4] sm:$0xff] }
  0xb1   : > { %v317_v15 = vpop.permute.xlu1 %316 }
  0xb2   : > { %vm318_vm2 = vcmp.eq.s32.totalorder %v312_v14, %v317_v15 }
  0xb3   : > { %v319_v22 = vsel %vm318_vm2, %v283_v2, 0.0 }
  0xb5   : > { %v328_v16 = vpop.permute.xlu1 %327 }
  0xb6   : > { %vm329_vm3 = vcmp.eq.s32.totalorder %v312_v14, %v328_v16 }
  0xb7   : > { %v330_v17 = vsel %vm329_vm3, %v283_v2, 0.0 }
  0xc0   : > { %v286_v8 = vpop.xlane.xlu0 %285 }
  0xc1   : > { %v288_v9 = vmax.f32 %v287_v7, %v286_v8 }
  0xc3   : > { %v289_v10 = vsub.f32 %v287_v7, %v288_v9  ;;  %307 = vst.msk [vmem:[#allocation2] sm:$0xff] %vm305_vm1, %v288_v9  ;;  %296 = vperm.xlu0 %630, %v288_v9  }
  0xc5   : > { %v290_v26 = vmul.f32 1.442695, %v289_v10 }
  0xe2   : > { %331 = vadd.xlane.f32.xlu0 %v330_v17 }
 0x13e   : > { %v297_v18 = vpop.permute.xlu0 %296 }
 0x13f   : > { %v299_v19 = vsub.f32 %v284_v3, %v297_v18 }
 0x141   : > { %v300_v20 = vmul.f32 1.442695, %v299_v19 }
 0x143   : > { %632 = vpow2.f32 %v300_v20 }
 0x144   : > { %634 = vpow2.f32 %v290_v26 }
 0x150   : > { %v633_v21 = vpop.eup %632 }
 0x151   : > { %302 = vadd.xlane.f32.xlu1 %v633_v21  ;;  %v635_v27 = vpop.eup %634 }
 0x152   : > { %v293_v29 = vmul.f32 %v635_v27, %v292_v28 }
 0x155   : > { %320 = vadd.xlane.f32.xlu1 %v319_v22 }
 0x16b   : > { %v332_v24 = vpop.xlane.xlu0 %331 }
 0x16c   : > { %v333_v25 = vadd.f32 %v332_v24, %v324_v23 }
 0x16e   : > { %334 = vst.msk [vmem:[#allocation5] sm:$0xff] %vm305_vm1, %v333_v25 }
 0x1da   : > { %v303_v30 = vpop.xlane.xlu1 %302 }
 0x1db   : > { %v304_v31 = vadd.f32 %v303_v30, %v293_v29 }
 0x1dd   : > { %306 = vst.msk [vmem:[#allocation3] sm:$0xff] %vm305_vm1, %v304_v31  ;;  %338 = sbr.rel (%p551_p10) target bundleno = 560 (0x230), region = 44 }
 0x1de   : > { %v321_v33 = vpop.xlane.xlu1 %320 }
 0x1df   : > { %v322_v34 = vadd.f32 %v321_v33, %v313_v32 }
 0x1e1   : > { %323 = vst.msk [vmem:[#allocation4] sm:$0xff] %vm305_vm1, %v322_v34 }
 0x1e2   : > { %v372_v37 = vld [vmem:[#allocation5] sm:$0xff]  ;;  %v339_v42 = vld [vmem:[#allocation2] sm:$0xff] }
 0x1e3   : > { %v373_v39 = vmul.f32 %v372_v37, %v372_v37  ;;  %v388_v47 = vmul.f32 30.0, %v372_v37  ;;  %v382_v60 = vmul.f32 0.87758255, %v372_v37  ;;  %v553_v0 = vadd.f32 -0.23971277, %v372_v37 }
 0x1e4   : > { %vm385_vm9 = vcmp.gt.f32.partialorder %v372_v37, -0.87758255  ;;  %v340_v11 = vld [vmem:[#allocation3] sm:$0xff] }
 0x1e5   : > { %v374_v40 = vsub.f32 1.0, %v373_v39  ;;  %v389_v57 = vsub.f32 %v388_v47, %v339_v42 }
 0x1e7   : > { %vm377_vm6 = vcmp.eq.f32.partialorder %v374_v40, inf  ;;  %v380_v52 = vand.u32 2147483648, %v374_v40  ;;  %vm379_vm7 = vcmp.eq.f32.partialorder %v374_v40, 0.0  ;;  %v390_v2 = vmul.f32 1.442695, %v389_v57 }
 0x1e8   : > { %v341_v35 = vld [vmem:[#allocation4] sm:$0xff] }
 0x1e9   : > { %v342_v36 = vmul.f32 %v341_v35, %v341_v35  ;;  %v357_v41 = vmul.f32 30.0, %v341_v35  ;;  %v351_v49 = vmul.f32 0.87758255, %v341_v35  ;;  %v552_v54 = vadd.f32 -0.23971277, %v341_v35 }
 0x1ea   : > { %vm354_vm8 = vcmp.gt.f32.partialorder %v341_v35, -0.87758255 }
 0x1eb   : > { %v343_v38 = vsub.f32 1.0, %v342_v36  ;;  %v358_v46 = vsub.f32 %v357_v41, %v339_v42 }
 0x1ed   : > { %636 = vrsqrt.f32 %v343_v38  ;;  %vm346_vm4 = vcmp.eq.f32.partialorder %v343_v38, inf  ;;  %v349_v44 = vand.u32 2147483648, %v343_v38  ;;  %vm348_vm5 = vcmp.eq.f32.partialorder %v343_v38, 0.0 }
 0x1ee   : > { %638 = vrsqrt.f32 %v374_v40  ;;  %v359_v56 = vmul.f32 1.442695, %v358_v46 }
 0x1f0   : > { %640 = vpow2.f32 %v359_v56 }
 0x1f1   : > { %642 = vpow2.f32 %v390_v2 }
 0x1fa   : > { %v637_v43 = vpop.eup %636 }
 0x1fb   : > { %v345_v45 = vmul.f32 %v637_v43, %v343_v38  ;;  %v639_v50 = vpop.eup %638 }
 0x1fc   : > { %v376_v55 = vmul.f32 %v639_v50, %v374_v40 }
 0x1fd   : > { %v347_v48 = vsel %vm346_vm4, %v343_v38, %v345_v45  ;;  %v641_v10 = vpop.eup %640 }
 0x1fe   : > { %v350_v51 = vsel %vm348_vm5, %v349_v44, %v347_v48  ;;  %v378_v59 = vsel %vm377_vm6, %v374_v40, %v376_v55  ;;  %v361_v12 = vsub.f32 %v340_v11, %v641_v10  ;;  %v643_v13 = vpop.eup %642 }
 0x1ff   : > { %v352_v53 = vmul.f32 0.47942555, %v350_v51  ;;  %v381_v61 = vsel %vm379_vm7, %v380_v52, %v378_v59  ;;  %v392_v16 = vsub.f32 %v340_v11, %v643_v13 }
 0x200   : > { %v383_v63 = vmul.f32 0.47942555, %v381_v61 }
 0x201   : > { %v353_v58 = vsub.f32 %v351_v49, %v352_v53 }
 0x202   : > { %v384_v3 = vsub.f32 %v382_v60, %v383_v63 }
 0x203   : > { %v356_v62 = vsel %vm354_vm8, %v353_v58, %v552_v54 }
 0x204   : > { %v362_v1 = vmul.f32 30.0, %v356_v62  ;;  %v387_v5 = vsel %vm385_vm9, %v384_v3, %v553_v0 }
 0x205   : > { %v393_v7 = vmul.f32 30.0, %v387_v5 }
 0x206   : > { %v363_v4 = vsub.f32 %v362_v1, %v339_v42 }
 0x207   : > { %v394_v8 = vsub.f32 %v393_v7, %v339_v42 }
 0x208   : > { %v364_v6 = vmul.f32 1.442695, %v363_v4 }
 0x209   : > { %v395_v9 = vmul.f32 1.442695, %v394_v8 }
 0x20a   : > { %644 = vpow2.f32 %v364_v6 }
 0x20b   : > { %646 = vpow2.f32 %v395_v9 }
 0x217   : > { %v645_v14 = vpop.eup %644 }
 0x218   : > { %v366_v15 = vadd.f32 %v645_v14, %v361_v12  ;;  %v647_v17 = vpop.eup %646 }
 0x219   : > { %v397_v18 = vadd.f32 %v647_v17, %v392_v16 }
 0x21a   : > { %648 = vlog2.f32 %v366_v15 }
 0x21b   : > { %650 = vlog2.f32 %v397_v18 }
 0x227   : > { %v649_v19 = vpop.eup %648 }
 0x228   : > { %v368_v20 = vmul.f32 0.6931472, %v649_v19  ;;  %v651_v22 = vpop.eup %650 }
 0x229   : > { %v399_v24 = vmul.f32 0.6931472, %v651_v22 }
 0x22a   : > { %v369_v21 = vadd.f32 %v368_v20, %v339_v42 }
 0x22b   : > { %v400_v25 = vadd.f32 %v399_v24, %v339_v42 }
 0x22c   : > { %v370_v23 = vsub.f32 %v369_v21, %v362_v1 }
 0x22d   : > { %v401_v26 = vsub.f32 %v400_v25, %v393_v7 }
 0x22e   : > { %371 = vst.msk [vmem:[%s269_s27] sm:$0xff] %vm305_vm1, %v370_v23 }
 0x22f   : > { %402 = vst.msk [vmem:[%s273_s19] sm:$0xff] %vm305_vm1, %v401_v26 }
 0x230 PF: > { %s18_s22 = sadd.s32 1, %s746_s22   ;;  %s946_s10 = sld [smem:[#allocation9_spill]] }
 0x231   : > { %p15_p11 = scmp.ge.s32.totalorder %s18_s22, 10   ;;  %s947_s15 = smov %s722_s16 }
 0x232   : > { %s948_s16 = smov %s726_s17  ;;  %s949_s17 = smov %s844_s9 }
 0x233   : > { %s950_s18 = smov %s738_s20  ;;  %s951_s19 = smov %s742_s21 }
 0x234   : > { %s952_s20 = smov %s955_s24  ;;  %17 = sbr.rel (!%p15_p11) target bundleno = 5 (0x5), region = 98 }
 0x236   : > { %s953_s21 = smov %s946_s10 }
 0x239   :  { %436 = vsyncpa [#allocation7], 1 }
 0x23a   :  { %438 = vsyncpa [#allocation7 + $0x1], 1 }

</bundles_post_ra>
